<compile_context>
chip_gen: v5e
topology: v5e:2x2
jax: 0.10.0
libtpu: 0.0.40
codegen_flags: <defaults>
</compile_context>

<pallas_src>
import math
import jax
import jax.numpy as jnp
from jax.experimental import pallas as pl
from jax.experimental.pallas import tpu as pltpu

_MiB = 1024 * 1024


# ---------------------------------------------------------------------------
# Kernel
# ---------------------------------------------------------------------------
def _swiglu_ffn_kernel(x_ref, w13_ref, w2_ref, o_ref, acc_ref):
    # x_ref:   (tm, dim)        row tile (resident across the hidden axis)
    # w13_ref: (dim, 2*th)      interleaved [W1 slab | W3 slab] for hidden block k
    # w2_ref:  (th, dim)        W2 slab for hidden block k
    # o_ref:   (tm, dim)        output tile (written once, at the last k step)
    # acc_ref: (tm, dim) f32    resident VMEM accumulator
    k = pl.program_id(1)
    th = w2_ref.shape[0]

    # One wide GEMM computes both the W1 and W3 slabs (native-dtype operands,
    # f32 accumulation on the MXU).
    h = jnp.dot(x_ref[...], w13_ref[...],
                preferred_element_type=jnp.float32)           # (tm, 2*th) f32
    h1 = h[:, :th]     # th is 128-aligned -> lane-aligned slices (no XLU repack)
    h3 = h[:, th:]
    gated = (h1 * jax.nn.sigmoid(h1)) * h3                    # silu(h1) * h3, f32

    # Second GEMM: cast activations back to the weight dtype, accumulate in f32.
    partial = jnp.dot(gated.astype(w2_ref.dtype), w2_ref[...],
                      preferred_element_type=jnp.float32)

    # Fold zero-init into the first accumulation (saves a (tm,dim) f32
    # zero-fill store + first read per row tile).
    @pl.when(k == 0)
    def _init():
        acc_ref[...] = partial

    @pl.when(k > 0)
    def _accum():
        acc_ref[...] += partial

    @pl.when(k == pl.num_programs(1) - 1)
    def _finalize():
        o_ref[...] = acc_ref[...].astype(o_ref.dtype)


# ---------------------------------------------------------------------------
# Tiling / budgeting helpers
# ---------------------------------------------------------------------------
def _pick_tile(total, target, mult):
    """Largest t <= target with total % t == 0 and t % mult == 0.
    Falls back to the full extent (always a legal block) if none exists."""
    if total <= target:
        return total
    t = (target // mult) * mult
    while t >= mult:
        if total % t == 0:
            return t
        t -= mult
    return total


def _chip_budgets():
    """(tm_target, th_target, vmem_cap_bytes) for the current TPU generation."""
    kind = ""
    try:
        kind = jax.devices()[0].device_kind.lower()
    except Exception:
        pass
    vmem_phys = None
    try:
        vmem_phys = int(pltpu.get_tpu_info().vmem_capacity_bytes)
    except Exception:
        pass

    if "v7" in kind:
        # ridge ~310 flop/B -> tm~512 is compute-bound; only 64 MiB physical VMEM.
        vmem_phys = vmem_phys or 64 * _MiB
        return 512, 256, min(vmem_phys - 8 * _MiB, 56 * _MiB)
    if "v6" in kind:
        # ridge ~650 flop/B -> big row tile; 128 MiB physical VMEM.
        vmem_phys = vmem_phys or 128 * _MiB
        return 1024, 256, min(vmem_phys - 18 * _MiB, 110 * _MiB)
    if "v5" in kind:
        # ridge ~240 flop/B -> tm~256 enough; big th halves acc ld/st traffic.
        vmem_phys = vmem_phys or 128 * _MiB
        return 256, 512, min(vmem_phys - 28 * _MiB, 100 * _MiB)
    # unknown / CPU interpret fallback: conservative.
    vmem_phys = vmem_phys or 64 * _MiB
    return 256, 256, min(vmem_phys - 16 * _MiB, 96 * _MiB)


def _row_mult(x_dtype):
    # sublane packing: f32 -> 8 rows/vreg-group, bf16 -> 16, fp8/int8 -> 32
    return {4: 8, 2: 16, 1: 32}.get(jnp.dtype(x_dtype).itemsize, 8)


def _vmem_need(tm, th, dim, x_dtype, w_dtype, out_dtype):
    """VMEM footprint estimate using each array's own itemsize."""
    xb = jnp.dtype(x_dtype).itemsize
    wb = jnp.dtype(w_dtype).itemsize
    ob = jnp.dtype(out_dtype).itemsize
    need = 0
    need += 2 * tm * dim * xb          # x row tile (double-buffered)
    need += 2 * dim * 2 * th * wb      # fused w13 slab (double-buffered)
    need += 2 * th * dim * wb          # w2 slab (double-buffered)
    need += 2 * tm * dim * ob          # output tile (double-buffered)
    need += tm * dim * 4               # f32 accumulator scratch
    need += 2 * tm * 2 * th * 4        # f32 h / gated intermediates (spill)
    return need


# ---------------------------------------------------------------------------
# pallas_call wrapper
# ---------------------------------------------------------------------------
def feedforward_pallas(x2d, w13, w2, *, tm, th, vmem_limit):
    """x2d: (M, dim). w13: (dim, 2*hidden) pre-packed. w2: (hidden, dim)."""
    M, dim = x2d.shape
    hidden = w2.shape[0]
    assert w13.shape == (dim, 2 * hidden)
    assert M % tm == 0
    assert hidden % th == 0
    kt = hidden // th
    grid = (M // tm, kt)  # row axis parallel, hidden/reduction axis LAST

    return pl.pallas_call(
        _swiglu_ffn_kernel,
        out_shape=jax.ShapeDtypeStruct((M, dim), x2d.dtype),
        grid_spec=pltpu.PrefetchScalarGridSpec(
            num_scalar_prefetch=0,
            grid=grid,
            in_specs=[
                pl.BlockSpec((tm, dim), lambda i, k: (i, 0)),       # x row tile
                pl.BlockSpec((dim, 2 * th), lambda i, k: (0, k)),   # fused W1|W3 slab
                pl.BlockSpec((th, dim), lambda i, k: (k, 0)),       # W2 slab
            ],
            out_specs=pl.BlockSpec((tm, dim), lambda i, k: (i, 0)),
            scratch_shapes=[pltpu.VMEM((tm, dim), jnp.float32)],
        ),
        compiler_params=pltpu.CompilerParams(
            dimension_semantics=("parallel", "arbitrary"),
            vmem_limit_bytes=int(vmem_limit),
        ),
    )(x2d, w13, w2)


# ---------------------------------------------------------------------------
# Module-level wrapper: packs w13 ONCE at construction (keyed on th)
# ---------------------------------------------------------------------------
def pack_w13(w1, w3, th):
    """One-time interleave of W1/W3 so each (dim, 2*th) hidden slab k is
    [W1[:, k*th:(k+1)*th] | W3[:, k*th:(k+1)*th]].  Do this at weight-load
    time, not per forward call."""
    dim, hidden = w1.shape
    assert hidden % th == 0
    kt = hidden // th
    return jnp.concatenate(
        [w1.reshape(dim, kt, th), w3.reshape(dim, kt, th)], axis=2
    ).reshape(dim, 2 * hidden)


class FeedForwardPallas:
    """Pallas TPU equivalent of the PyTorch FeedForward (eval mode)."""

    def __init__(self, w1, w2, w3, dropout=0.0, *, th=None):
        self.dim, self.hidden = w1.shape
        assert w3.shape == (self.dim, self.hidden)
        assert w2.shape == (self.hidden, self.dim)
        self.w_dtype = w1.dtype
        self.dropout = dropout  # eval-mode identity

        self.tm_target, th_target, self.vmem_cap = _chip_budgets()
        # th 128-aligned (prefer 256/512 per chip) so the gate split is lane-aligned.
        self.th = th if th is not None else _pick_tile(self.hidden, th_target, 128)
        assert self.hidden % self.th == 0
        # One-time weight pack (a full weight-sized pass, done exactly once).
        self.w13 = pack_w13(w1, w3, self.th)
        self.w2 = w2

    def _choose_tm(self, M, x_dtype, tm_override=None):
        rm = _row_mult(x_dtype)
        if tm_override is not None:
            assert M % tm_override == 0
            return tm_override
        tm = _pick_tile(M, self.tm_target, rm)
        # Shrink until the footprint fits the per-generation VMEM cap.
        while (_vmem_need(tm, self.th, self.dim, x_dtype, self.w_dtype, x_dtype)
               > self.vmem_cap and tm > rm):
            nxt = _pick_tile(M, tm - rm, rm)
            if nxt >= tm:
                break
            tm = nxt
        # Megacore: keep >= 2 row tiles when M allows so both v7x cores get work.
        if M // tm < 2:
            smaller = _pick_tile(M, max(rm, tm // 2), rm)
            if smaller < tm and M // smaller >= 2:
                tm = smaller
        return tm

    def __call__(self, x, *, tm=None):
        batch, seq, dim = x.shape
        assert dim == self.dim
        x2d = x.reshape(batch * seq, dim)
        M = x2d.shape[0]

        tm = self._choose_tm(M, x2d.dtype, tm)
        need = _vmem_need(tm, self.th, dim, x2d.dtype, self.w_dtype, x2d.dtype)
        if need > self.vmem_cap:
            raise ValueError(
                f"FFN tile footprint {need/_MiB:.1f} MiB exceeds the "
                f"{self.vmem_cap/_MiB:.1f} MiB VMEM budget; shrink tm/th.")
        vmem_limit = int(min(self.vmem_cap, max(32 * _MiB, need + need // 4)))

        out2d = feedforward_pallas(x2d, self.w13, self.w2,
                                   tm=tm, th=self.th, vmem_limit=vmem_limit)
        return out2d.reshape(batch, seq, dim)


def compute_hidden_dim(dim, hidden_dim, multiple_of):
    if hidden_dim is None:
        hidden_dim = 4 * dim
        hidden_dim = int(2 * hidden_dim / 3)
        hidden_dim = multiple_of * ((hidden_dim + multiple_of - 1) // multiple_of)
    return hidden_dim


# ---------------------------------------------------------------------------
# Demo / correctness check
# ---------------------------------------------------------------------------
if __name__ == "__main__":
    batch, seq, dim = 2, 8, 128
    multiple_of = 128
    hidden_dim = compute_hidden_dim(dim, None, multiple_of)   # -> 384

    key = jax.random.PRNGKey(0)
    kx, k1, k2, k3 = jax.random.split(key, 4)

    x = jax.random.normal(kx, (batch, seq, dim), dtype=jnp.float32)

    # Deterministic "Linear(bias=False)"-style init (Kaiming-uniform bound),
    # stored transposed so the kernel computes x @ W.
    def linear_weight(k, fan_in, fan_out):
        bound = 1.0 / math.sqrt(fan_in)
        w_torch_layout = jax.random.uniform(
            k, (fan_out, fan_in), minval=-bound, maxval=bound, dtype=jnp.float32)
        return w_torch_layout.T

    w1 = linear_weight(k1, dim, hidden_dim)     # (dim, hidden)
    w2 = linear_weight(k2, hidden_dim, dim)     # (hidden, dim)
    w3 = linear_weight(k3, dim, hidden_dim)     # (dim, hidden)

    # Pure-JAX reference (dropout p==0 -> identity)
    x2d = x.reshape(batch * seq, dim)
    ref = (jax.nn.silu(x2d @ w1) * (x2d @ w3) @ w2).reshape(batch, seq, dim)

    # 1) Auto-tiled (generation-aware) path.
    ffn_auto = FeedForwardPallas(w1, w2, w3, dropout=0.0)   # packs w13 once here
    out_auto = ffn_auto(x)
    jax.block_until_ready(out_auto)
    assert jnp.allclose(out_auto, ref, atol=1e-5, rtol=1e-5), "auto-tile mismatch"

    # 2) Forced small tiles (th=128 -> 3 hidden slabs, tm=8 -> 2 row tiles) to
    #    exercise the init / accumulate / finalize and multi-row-tile paths.
    ffn_small = FeedForwardPallas(w1, w2, w3, dropout=0.0, th=128)
    out_small = ffn_small(x, tm=8)
    jax.block_until_ready(out_small)
    assert jnp.allclose(out_small, ref, atol=1e-5, rtol=1e-5), "small-tile mismatch"

    print("KERNEL_OK")
</pallas_src>

<mosaic_0001>
module attributes {stable_mosaic.version = 11 : i64} {
  func.func @_swiglu_ffn_kernel(%arg0: i32, %arg1: i32, %arg2: memref<8x128xf32, #tpu.memory_space<vmem>>, %arg3: memref<128x256xf32, #tpu.memory_space<vmem>>, %arg4: memref<128x128xf32, #tpu.memory_space<vmem>>, %arg5: memref<8x128xf32, #tpu.memory_space<vmem>>, %arg6: memref<8x128xf32, #tpu.memory_space<vmem>>) attributes {dimension_semantics = [#tpu.dimension_semantics<parallel>, #tpu.dimension_semantics<arbitrary>], iteration_bounds = array<i64: 2, 3>, scalar_prefetch = 0 : i64, scratch_operands = 1 : i64, tpu.core_type = #tpu.core_type<tc>, window_params = [{transform_indices = @transform_0, window_bounds = array<i64: 8, 128>}, {transform_indices = @transform_1, window_bounds = array<i64: 128, 256>}, {transform_indices = @transform_2, window_bounds = array<i64: 128, 128>}, {transform_indices = @transform_3, window_bounds = array<i64: 8, 128>}]} {
    %c0 = arith.constant 0 : index
    %c0_0 = arith.constant 0 : index
    %0 = vector.load %arg2[%c0, %c0_0] : memref<8x128xf32, #tpu.memory_space<vmem>>, vector<8x128xf32>
    %c0_1 = arith.constant 0 : index
    %c0_2 = arith.constant 0 : index
    %1 = vector.load %arg3[%c0_1, %c0_2] : memref<128x256xf32, #tpu.memory_space<vmem>>, vector<128x256xf32>
    %cst = arith.constant dense<0.000000e+00> : vector<8x256xf32>
    %2 = tpu.matmul %0, %1, %cst {dimension_numbers = #tpu.dot_dimension_numbers<[1], [0], [0], [1], [0, 0, 1, 1], [], []>} : vector<8x128xf32>, vector<128x256xf32>, vector<8x256xf32> -> vector<8x256xf32>
    %3 = vector.extract_strided_slice %2 {offsets = [0, 0], sizes = [8, 128], strides = [1, 1]} : vector<8x256xf32> to vector<8x128xf32>
    %4 = vector.extract_strided_slice %2 {offsets = [0, 128], sizes = [8, 128], strides = [1, 1]} : vector<8x256xf32> to vector<8x128xf32>
    %5 = arith.negf %3 : vector<8x128xf32>
    %6 = math.exp %5 : vector<8x128xf32>
    %cst_3 = arith.constant 1.000000e+00 : f32
    %7 = vector.broadcast %cst_3 : f32 to vector<8x128xf32>
    %8 = arith.addf %7, %6 : vector<8x128xf32>
    %9 = arith.divf %7, %8 : vector<8x128xf32>
    %10 = arith.mulf %3, %9 : vector<8x128xf32>
    %11 = arith.mulf %10, %4 : vector<8x128xf32>
    %c0_4 = arith.constant 0 : index
    %c0_5 = arith.constant 0 : index
    %12 = vector.load %arg4[%c0_4, %c0_5] : memref<128x128xf32, #tpu.memory_space<vmem>>, vector<128x128xf32>
    %cst_6 = arith.constant dense<0.000000e+00> : vector<8x128xf32>
    %13 = tpu.matmul %11, %12, %cst_6 {dimension_numbers = #tpu.dot_dimension_numbers<[1], [0], [0], [1], [0, 0, 1, 1], [], []>} : vector<8x128xf32>, vector<128x128xf32>, vector<8x128xf32> -> vector<8x128xf32>
    %c0_i32 = arith.constant 0 : i32
    %14 = arith.cmpi eq, %arg1, %c0_i32 : i32
    %15 = arith.extui %14 : i1 to i32
    %c0_i32_7 = arith.constant 0 : i32
    %16 = arith.cmpi ne, %15, %c0_i32_7 : i32
    scf.if %16 {
      %c0_11 = arith.constant 0 : index
      %c0_12 = arith.constant 0 : index
      %23 = vector.load %arg6[%c0_11, %c0_12] : memref<8x128xf32, #tpu.memory_space<vmem>>, vector<8x128xf32>
      tpu.vector_store %arg6[%c0_11, %c0_12], %13 {strides = array<i32>} : memref<8x128xf32, #tpu.memory_space<vmem>>, vector<8x128xf32>,
    } else {
    }
    %c0_i32_8 = arith.constant 0 : i32
    %17 = arith.cmpi sgt, %arg1, %c0_i32_8 : i32
    %18 = arith.extui %17 : i1 to i32
    %c0_i32_9 = arith.constant 0 : i32
    %19 = arith.cmpi ne, %18, %c0_i32_9 : i32
    scf.if %19 {
      %c0_11 = arith.constant 0 : index
      %c0_12 = arith.constant 0 : index
      %23 = vector.load %arg6[%c0_11, %c0_12] : memref<8x128xf32, #tpu.memory_space<vmem>>, vector<8x128xf32>
      %24 = arith.addf %23, %13 : vector<8x128xf32>
      %c0_13 = arith.constant 0 : index
      %c0_14 = arith.constant 0 : index
      %25 = vector.load %arg6[%c0_13, %c0_14] : memref<8x128xf32, #tpu.memory_space<vmem>>, vector<8x128xf32>
      tpu.vector_store %arg6[%c0_13, %c0_14], %24 {strides = array<i32>} : memref<8x128xf32, #tpu.memory_space<vmem>>, vector<8x128xf32>,
    } else {
    }
    %c2_i32 = arith.constant 2 : i32
    %20 = arith.cmpi eq, %arg1, %c2_i32 : i32
    %21 = arith.extui %20 : i1 to i32
    %c0_i32_10 = arith.constant 0 : i32
    %22 = arith.cmpi ne, %21, %c0_i32_10 : i32
    scf.if %22 {
      %c0_11 = arith.constant 0 : index
      %c0_12 = arith.constant 0 : index
      %23 = vector.load %arg6[%c0_11, %c0_12] : memref<8x128xf32, #tpu.memory_space<vmem>>, vector<8x128xf32>
      %c0_13 = arith.constant 0 : index
      %c0_14 = arith.constant 0 : index
      %24 = vector.load %arg5[%c0_13, %c0_14] : memref<8x128xf32, #tpu.memory_space<vmem>>, vector<8x128xf32>
      tpu.vector_store %arg5[%c0_13, %c0_14], %23 {strides = array<i32>} : memref<8x128xf32, #tpu.memory_space<vmem>>, vector<8x128xf32>,
    } else {
    }
    return
  }
  func.func @transform_0(%arg0: i32, %arg1: i32) -> (i32, i32) {
    %c0_i32 = arith.constant 0 : i32
    %c0_i32_0 = arith.constant 0 : i32
    return %arg0, %c0_i32 : i32, i32
  }
  func.func @transform_1(%arg0: i32, %arg1: i32) -> (i32, i32) {
    %c0_i32 = arith.constant 0 : i32
    %c0_i32_0 = arith.constant 0 : i32
    return %c0_i32, %arg1 : i32, i32
  }
  func.func @transform_2(%arg0: i32, %arg1: i32) -> (i32, i32) {
    %c0_i32 = arith.constant 0 : i32
    %c0_i32_0 = arith.constant 0 : i32
    return %arg1, %c0_i32 : i32, i32
  }
  func.func @transform_3(%arg0: i32, %arg1: i32) -> (i32, i32) {
    %c0_i32 = arith.constant 0 : i32
    %c0_i32_0 = arith.constant 0 : i32
    return %arg0, %c0_i32 : i32, i32
  }
}

</mosaic_0001>

<bundles_post_ra>
// kernel: tpu_custom_call.1
= control target key start
LH: loop header
LB: loop body
LE: loop exit
PB: predicated region body
PF: predicated region fallthrough
CT: control target
= control target key end

     0   :  { %s1268_s0 = inlined_call_operand.hbm [shape: f32[16,128], index: 0, kind: input, shape index: {}]   ;;  %s1269_s1 = inlined_call_operand.hbm [shape: f32[128,768], index: 1, kind: input, shape index: {}]   ;;  %s1270_s2 = inlined_call_operand.hbm [shape: f32[384,128], index: 2, kind: input, shape index: {}]   ;;  %s1271_s3 = inlined_call_operand.hbm [shape: f32[16,128], index: 3, kind: output, shape index: {}]  }
   0x1   :  { %1282 = sst [smem:[#allocation22_spill]] %s1269_s1 }
   0x2   :  { %1283 = sst [smem:[#allocation23_spill]] %s1271_s3 }
   0x3   :  { %8 = vsyncpa [#allocation4], 0 }
   0x4   :  { %10 = vsyncpa [#allocation4 + $0x1], 0 }
   0x5   :  { %11 = vsyncpa [#allocation7], 0 }
   0x6   :  { %13 = vsyncpa [#allocation7 + $0x1], 0 }
   0x7   :  { %14 = vsyncpa [#allocation5], 0 }
   0x8   :  { %16 = vsyncpa [#allocation5 + $0x1], 0  ;;  %s962_s12 = smov 0   ;;  %s964_s13 = smov 0  }
   0x9   :  { %s966_s14 = smov 0   ;;  %s968_s15 = smov 0  }
   0xa   :  { %s970_s16 = smov 0   ;;  %s972_s17 = smov 0  }
   0xb   :  { %s974_s18 = smov 0   ;;  %s976_s19 = smov 0  }
   0xc   :  { %s978_s20 = smov 0   ;;  %s980_s21 = smov 0  }
   0xd   :  { %s982_s22 = smov 0  }
   0xe LB: > { %1284 = sst [smem:[#allocation13_spill]] %s907_s15  ;;  %p49_p0 = scmp.eq.s32.totalorder %s935_s22, 0  ;;  %s935_s22 = sphi %s982_s22, %s22_s22   ;;  %s931_s21 = sphi %s980_s21, %s1311_s21   ;;  %s927_s20 = sphi %s978_s20, %s1318_s20   ;;  %s923_s19 = sphi %s976_s19, %s1309_s19   ;;  %s919_s18 = sphi %s974_s18, %s1317_s18   ;;  %s915_s17 = sphi %s972_s17, %s1308_s17   ;;  %s911_s16 = sphi %s970_s16, %s1316_s16   ;;  %s907_s15 = sphi %s968_s15, %s1315_s15   ;;  %s903_s14 = sphi %s966_s14, %s1314_s14   ;;  %s899_s13 = sphi %s964_s13, %s1313_s13   ;;  %s895_s12 = sphi %s962_s12, %s1312_s12  }
   0xf   : > { %1285 = sst [smem:[#allocation14_spill]] %s915_s17  ;;  %s67_s23 = sadd.s32 1, %s903_s14 }
  0x10   : > { %1286 = sst [smem:[#allocation15_spill]] %s931_s21  ;;  %p74_p1 = scmp.ne.s32.totalorder %s903_s14, %s899_s13 }
  0x11   : > { %p620_p2 = scmp.lt.s32.totalorder %s935_s22, 6  ;;  %s175_s24 = sand.u32 1, %s935_s22  }
  0x12   : > { %p76_p3 = por %p74_p1, %p49_p0  ;;  %s1272_s25 = sand.u32 1, %s903_s14  }
  0x13   : > { %s596_s26 = sshll.u32 %s927_s20, 4  ;;  %s577_s27 = sshll.u32 %s1272_s25, 8 }
  0x14   : > { %s1287_s1 = sld [smem:[#allocation22_spill]]  ;;  %s179_s5 = scalar_lea.vmem [#allocation6], %s577_s27 }
  0x15   : > { %s187_s6 = sshll.u32 %s179_s5, 4  ;;  %p1034_p4 = pnand %p620_p2, %p76_p3  ;;  %s188_s6 = int_to_ptr.vmem [resolvable:$true] %s187_s6 }
  0x16   : > { %s1038_s8 = scalar_lea.sflag [#allocation7], %s175_s24  ;;  %s937_s9 = smov 768  }
  0x17   : > { %s938_s10 = smov 256   ;;  %s939_s11 = smov 16  }
  0x18   : > { %p583_p5 = scmp.ge.s32.totalorder %s935_s22, 1  ;;  %p217_p6 = scmp.lt.s32.totalorder %s935_s22, 7 }
  0x19   : > { %s572_s27 = sadd.s32 4294967294, %s935_s22   ;;  %s31_s28 = sadd.s32 1, %s927_s20 }
  0x1a   : > { %s184_s30 = scalar_lea.hbm %s1287_s1, %s596_s26  ;;  %p1045_p7 = pnand %p583_p5, %p217_p6 }
  0x1b   : > { %s185_s4 = sshll.u32 %s184_s30, 4  ;;  %s1050_s26 = sadd.s32 4294967295, %s935_s22   ;;  %s186_s4 = int_to_ptr.hbm [resolvable:$true] %s185_s4 }
  0x1c   : > { %612 = dma.hbm_to_vmem [thread:$0]  (!%p1034_p4), %s186_s4, 4096, %s188_s6, %s1038_s8, %s937_s9, %s938_s10, %s939_s11  }
  0x1d   : > { %p32_p8 = scmp.ge.s32.totalorder %s31_s28, 3  ;;  %s34_s29 = sadd.s32 1, %s931_s21 }
  0x1e   : > { %s41_s30 = sadd.s32 1, %s915_s17  ;;  %p48_p9 = scmp.ne.s32.totalorder %s915_s17, %s911_s16 }
  0x1f   : > { %s1320_s28 = smov (%p32_p8, %s31_s28), 0  ;;  %s1322_s29 = smov (!%p32_p8, %s34_s29), %s931_s21 }
  0x20   : > { %1290 = sst [smem:[#allocation16_spill]] %s1320_s28  ;;  %p1066_p10 = por %p49_p0, %p48_p9 }
  0x21   : > { %p54_p11 = scmp.ne.s32.totalorder %s911_s16, %s907_s15  ;;  %p36_p12 = scmp.ge.s32.totalorder %s1322_s29, 2 }
  0x22   : > { %p55_p13 = scmp.eq.s32.totalorder %s1050_s26, 0  ;;  %s64_s5 = ssub.s32 %s927_s20, %s1320_s28 }
  0x23   : > { %p80_p1 = scmp.ne.s32.totalorder %s899_s13, %s895_s12  ;;  %s1324_s29 = smov (%p36_p12, %s1322_s29), 0 }
  0x24   : > { %1292 = sst [smem:[#allocation17_spill]] %s1324_s29  ;;  %p1082_p3 = por %p55_p13, %p54_p11 }
  0x25   : > { %p65_p0 = scmp.eq.s32.totalorder %s64_s5, 0  ;;  %s38_s9 = ssub.s32 %s931_s21, %s1324_s29 }
  0x26   : > { %p1088_p5 = por %p80_p1, %p55_p13  ;;  %p39_p6 = scmp.eq.s32.totalorder %s38_s9, 0 }
  0x27   : > { %p130_p8 = scmp.eq.s32.totalorder %s1050_s26, 5  ;;  %p136_p13 = scmp.eq.s32.totalorder %s572_s27, 5 }
  0x28   : > { %s1096_s12 = scalar_select %p65_p0, %s903_s14, %s67_s23  }
  0x29   : > { %s1099_s11 = scalar_select %p39_p6, %s915_s17, %s41_s30  }
  0x2a   : > { %1295 = sst [smem:[#allocation18_spill]] %s1096_s12  ;;  %p1104_p12 = por %p130_p8, %p48_p9 }
  0x2b   : > { %1296 = sst [smem:[#allocation19_spill]] %s1099_s11  ;;  %s156_s5 = sand.u32 1, %s915_s17  }
  0x2c   : > { %s1297_s25 = scalar_select %p1104_p12, 1, 0 }
  0x2d   : > { %s576_s1 = sshll.u32 %s931_s21, 3  ;;  %p1113_p1 = por %p136_p13, %p54_p11 }
  0x2e   : > { %1298 = sst [smem:[#allocation20_spill]] %s1297_s25  ;;  %s575_s29 = sshll.u32 %s156_s5, 3 }
  0x2f   : > { %s1299_s9 = scalar_select %p1113_p1, 1, 0 }
  0x30   : > { %s164_s12 = scalar_lea.hbm %s1268_s0, %s576_s1  ;;  %s160_s11 = scalar_lea.vmem [#allocation3], %s575_s29 }
  0x31   : > { %1300 = sst [smem:[#allocation21_spill]] %s1299_s9  ;;  %s166_s30 = sshll.u32 %s164_s12, 4  ;;  %s167_s30 = int_to_ptr.hbm [resolvable:$true] %s166_s30 }
  0x32   : > { %s168_s3 = sshll.u32 %s160_s11, 4  ;;  %p607_p9 = pnand %p620_p2, %p1066_p10  ;;  %s169_s3 = int_to_ptr.vmem [resolvable:$true] %s168_s3 }
  0x33   : > { %s1301_s27 = sand.u32 1, %s903_s14   ;;  %s597_s17 = sshll.u32 %s927_s20, 7 }
  0x34   : > { %s580_s21 = sshll.u32 %s1301_s27, 7  ;;  %s157_s15 = scalar_lea.sflag [#allocation4], %s156_s5 }
  0x35   : > { %609 = dma.hbm_to_vmem [thread:$0]  (!%p607_p9), %s167_s30, 128, %s169_s3, %s157_s15  }
  0x36   : > { %s206_s28 = scalar_lea.hbm %s1270_s2, %s597_s17  ;;  %s201_s1 = scalar_lea.vmem [#allocation8], %s580_s21 }
  0x37   : > { %s209_s12 = sshll.u32 %s201_s1, 4  ;;  %s207_s23 = sshll.u32 %s206_s28, 4  ;;  %s210_s12 = int_to_ptr.vmem [resolvable:$true] %s209_s12  ;;  %s208_s23 = int_to_ptr.hbm [resolvable:$true] %s207_s23 }
  0x38   : > { %s940_s29 = smov 128   ;;  %s941_s11 = smov 8  }
  0x39   : > { %615 = dma.hbm_to_vmem [thread:$0]  (!%p1034_p4), %s208_s23, 2048, %s210_s12, %s1038_s8, %s940_s29, %s940_s29, %s941_s11  }
  0x3a   : > { %221 = sbr.rel (%p1045_p7) target bundleno = 431 (0x1af), region = 32  ;;  %s1136_s4 = sand.u32 (!%p1045_p7), 1, %s911_s16  }
  0x3b   : > { %s584_s3 = sshll.u32 (!%p1045_p7), %s1136_s4, 3  ;;  %s224_s15 = scalar_lea.sflag (!%p1045_p7), [#allocation4], %s1136_s4 }
  0x3c   : > { %s1142_s17 = scalar_lea.vmem (!%p1045_p7), [#allocation3], %s584_s3 }
  0x3f   : > { %882 = dma.done.wait (%p1082_p3), %s224_s15, 128  }
  0x40   : > { %884 = vsyncadd (%p1082_p3), %s224_s15, 4294967168  ;;  %s233_s21 = sand.u32 1, %s1050_s26   ;;  %s235_s25 = sand.u32 1, %s899_s13  }
  0x41   : > { %s585_s7 = sshll.u32 %s235_s25, 8  ;;  %s234_s8 = scalar_lea.sflag [#allocation7], %s233_s21 }
  0x42   : > { %s1152_s24 = scalar_lea.vmem [#allocation6], %s585_s7 }
  0x43   : > { %886 = dma.done.wait (%p1088_p5), %s234_s8, 6144  }
  0x44   : > { %888 = vsyncadd (%p1088_p5), %s234_s8, 4294961152  ;;  %v314_v0 = vld [vmem:[%s1152_s24 + $0xf0] sm:$0xff]  ;;  %v312_v1 = vld [vmem:[%s1152_s24 + $0xe0] sm:$0xff]  ;;  %s586_s26 = sshll.u32 %s235_s25, 7  ;;  %s280_s10 = scalar_lea.vmem [#allocation9], %s584_s3 }
  0x45   : > { %316 = vmatpush.msra.mxu0 %v314_v0  ;;  %v310_v2 = vld [vmem:[%s1152_s24 + $0xd0] sm:$0xff]  ;;  %v308_v3 = vld [vmem:[%s1152_s24 + $0xc0] sm:$0xff]  ;;  %v315_v4 = vld [vmem:[%s1152_s24 + $0xf8] sm:$0xff]  ;;  %s1193_s6 = scalar_lea.vmem [#allocation8], %s586_s26  ;;  %p589_p2 = scmp.ne.s32.totalorder %s919_s18, 0 }
  0x46   : > { %v306_v5 = vld [vmem:[%s1152_s24 + $0xb0] sm:$0xff]  ;;  %336 = vmatpush.msra.mxu1 %v315_v4  ;;  %v313_v6 = vld [vmem:[%s1152_s24 + $0xe8] sm:$0xff]  ;;  %v311_v7 = vld [vmem:[%s1152_s24 + $0xd8] sm:$0xff] }
  0x47   : > { %317 = vmatpush.msra.mxu0 %v312_v1  ;;  %v304_v8 = vld [vmem:[%s1152_s24 + $0xa0] sm:$0xff]  ;;  %v309_v9 = vld [vmem:[%s1152_s24 + $0xc8] sm:$0xff]  ;;  %v302_v10 = vld [vmem:[%s1152_s24 + $0x90] sm:$0xff] }
  0x48   : > { %337 = vmatpush.msra.mxu1 %v313_v6  ;;  %v307_v11 = vld [vmem:[%s1152_s24 + $0xb8] sm:$0xff]  ;;  %v300_v12 = vld [vmem:[%s1152_s24 + $0x80] sm:$0xff]  ;;  %v305_v13 = vld [vmem:[%s1152_s24 + $0xa8] sm:$0xff] }
  0x49   : > { %318 = vmatpush.msra.mxu0 %v310_v2  ;;  %v298_v14 = vld [vmem:[%s1152_s24 + $0x70] sm:$0xff]  ;;  %v303_v15 = vld [vmem:[%s1152_s24 + $0x98] sm:$0xff]  ;;  %v296_v16 = vld [vmem:[%s1152_s24 + $0x60] sm:$0xff] }
  0x4a   : > { %338 = vmatpush.msra.mxu1 %v311_v7  ;;  %v301_v17 = vld [vmem:[%s1152_s24 + $0x88] sm:$0xff]  ;;  %v294_v18 = vld [vmem:[%s1152_s24 + $0x50] sm:$0xff]  ;;  %v299_v19 = vld [vmem:[%s1152_s24 + $0x78] sm:$0xff] }
  0x4b   : > { %319 = vmatpush.msra.mxu0 %v308_v3  ;;  %v292_v20 = vld [vmem:[%s1152_s24 + $0x40] sm:$0xff]  ;;  %v297_v21 = vld [vmem:[%s1152_s24 + $0x68] sm:$0xff]  ;;  %v290_v22 = vld [vmem:[%s1152_s24 + $0x30] sm:$0xff] }
  0x4c   : > { %339 = vmatpush.msra.mxu1 %v309_v9  ;;  %v295_v23 = vld [vmem:[%s1152_s24 + $0x58] sm:$0xff]  ;;  %v288_v24 = vld [vmem:[%s1152_s24 + $0x20] sm:$0xff]  ;;  %v293_v25 = vld [vmem:[%s1152_s24 + $0x48] sm:$0xff] }
  0x4d   : > { %320 = vmatpush.msra.mxu0 %v306_v5  ;;  %v286_v26 = vld [vmem:[%s1152_s24 + $0x10] sm:$0xff]  ;;  %v291_v27 = vld [vmem:[%s1152_s24 + $0x38] sm:$0xff]  ;;  %v284_v28 = vld [vmem:[%s1152_s24] sm:$0xff] }
  0x4e   : > { %340 = vmatpush.msra.mxu1 %v307_v11  ;;  %v283_v29 = vld [vmem:[%s1142_s17] sm:$0xff]  ;;  %v289_v30 = vld [vmem:[%s1152_s24 + $0x28] sm:$0xff]  ;;  %v389_v36 = vld [vmem:[%s1193_s6 + $0x60] sm:$0xff] }
  0x4f   : > { %321 = vmatpush.msra.mxu0 %v304_v8  ;;  %v287_v31 = vld [vmem:[%s1152_s24 + $0x18] sm:$0xff]  ;;  %v285_v32 = vld [vmem:[%s1152_s24 + $0x8] sm:$0xff]  ;;  %v391_v34 = vld [vmem:[%s1193_s6 + $0x70] sm:$0xff] }
  0x50   : > { %341 = vmatpush.msra.mxu1 %v305_v13  ;;  %v392_v33 = vld [vmem:[%s1193_s6 + $0x78] sm:$0xff]  ;;  %v390_v35 = vld [vmem:[%s1193_s6 + $0x68] sm:$0xff]  ;;  %v387_v38 = vld [vmem:[%s1193_s6 + $0x50] sm:$0xff] }
  0x51   : > { %322 = vmatpush.msra.mxu0 %v302_v10  ;;  %393 = vmatpush.msra.mxu2 %v392_v33  ;;  %v388_v37 = vld [vmem:[%s1193_s6 + $0x58] sm:$0xff]  ;;  %v386_v39 = vld [vmem:[%s1193_s6 + $0x48] sm:$0xff]  ;;  %v385_v40 = vld [vmem:[%s1193_s6 + $0x40] sm:$0xff] }
  0x52   : > { %342 = vmatpush.msra.mxu1 %v303_v15  ;;  %v384_v41 = vld [vmem:[%s1193_s6 + $0x38] sm:$0xff]  ;;  %v383_v42 = vld [vmem:[%s1193_s6 + $0x30] sm:$0xff]  ;;  %v382_v43 = vld [vmem:[%s1193_s6 + $0x28] sm:$0xff] }
  0x53   : > { %323 = vmatpush.msra.mxu0 %v300_v12  ;;  %394 = vmatpush.msra.mxu2 %v391_v34  ;;  %v381_v44 = vld [vmem:[%s1193_s6 + $0x20] sm:$0xff]  ;;  %v380_v45 = vld [vmem:[%s1193_s6 + $0x18] sm:$0xff]  ;;  %v379_v46 = vld [vmem:[%s1193_s6 + $0x10] sm:$0xff] }
  0x54   : > { %343 = vmatpush.msra.mxu1 %v301_v17  ;;  %v378_v47 = vld [vmem:[%s1193_s6 + $0x8] sm:$0xff]  ;;  %v377_v48 = vld [vmem:[%s1193_s6] sm:$0xff] }
  0x55   : > { %324 = vmatpush.msra.mxu0 %v298_v14  ;;  %395 = vmatpush.msra.mxu2 %v390_v35 }
  0x56   : > { %344 = vmatpush.msra.mxu1 %v299_v19 }
  0x57   : > { %325 = vmatpush.msra.mxu0 %v296_v16  ;;  %396 = vmatpush.msra.mxu2 %v389_v36 }
  0x58   : > { %345 = vmatpush.msra.mxu1 %v297_v21 }
  0x59   : > { %326 = vmatpush.msra.mxu0 %v294_v18  ;;  %397 = vmatpush.msra.mxu2 %v388_v37 }
  0x5a   : > { %346 = vmatpush.msra.mxu1 %v295_v23 }
  0x5b   : > { %327 = vmatpush.msra.mxu0 %v292_v20  ;;  %398 = vmatpush.msra.mxu2 %v387_v38 }
  0x5c   : > { %347 = vmatpush.msra.mxu1 %v293_v25 }
  0x5d   : > { %328 = vmatpush.msra.mxu0 %v290_v22  ;;  %399 = vmatpush.msra.mxu2 %v386_v39 }
  0x5e   : > { %348 = vmatpush.msra.mxu1 %v291_v27 }
  0x5f   : > { %329 = vmatpush.msra.mxu0 %v288_v24  ;;  %400 = vmatpush.msra.mxu2 %v385_v40 }
  0x60   : > { %349 = vmatpush.msra.mxu1 %v289_v30 }
  0x61   : > { %330 = vmatpush.msra.mxu0 %v286_v26  ;;  %401 = vmatpush.msra.mxu2 %v384_v41 }
  0x62   : > { %350 = vmatpush.msra.mxu1 %v287_v31 }
  0x63   : > { %331 = vmatpush.msra.mxu0 %v284_v28  ;;  %402 = vmatpush.msra.mxu2 %v383_v42 }
  0x64   : > { %332 = vmatmul.f32.vlgmr.msra.gmra.mxu0 %v283_v29  ;;  %351 = vmatpush.msra.mxu1 %v285_v32 }
  0x65   : > { %352 = vmatmul.f32.vlgmr.msra.gmra.mxu1 %v283_v29  ;;  %403 = vmatpush.msra.mxu2 %v382_v43 }
  0x67   : > { %404 = vmatpush.msra.mxu2 %v381_v44 }
  0x69   : > { %405 = vmatpush.msra.mxu2 %v380_v45 }
  0x6b   : > { %406 = vmatpush.msra.mxu2 %v379_v46 }
  0x6d   : > { %407 = vmatpush.msra.mxu2 %v378_v47 }
  0x6f   : > { %408 = vmatpush.msra.mxu2 %v377_v48 }
  0xe1   : > { %v333_v49 = vpop.f32.mrf.mxu0 }
  0xe2   : > { %v588_v50 = vmul.f32 -1.442695, %v333_v49  ;;  %v353_v63 = vpop.f32.mrf.mxu1 }
  0xe4   : > { %715 = vpow2.f32 %v588_v50 }
  0xea   : > { %v716_v51 = vpop.eup %715 }
  0xeb   : > { %v359_v52 = vadd.f32 1.0, %v716_v51 }
  0xed   : > { %717 = vrcp.f32 %v359_v52  ;;  %v371_v56 = vand.u32 2147483648, %v359_v52  ;;  %v369_v58 = vand.u32 2147483647, %v359_v52  ;;  %vm365_vm1 = vweird.f32 %v359_v52 }
  0xef   : > { %v372_v60 = vor.u32 1.1754944e-38, %v371_v56  ;;  %vm370_vm3 = vcmp.eq.f32.partialorder %v369_v58, 8.507059e+37 }
  0xf3   : > { %v718_v53 = vpop.eup %717 }
  0xf4   : > { %v361_v54 = vmul.f32 %v718_v53, %v359_v52  ;;  %vm366_vm0 = vweird.f32 %v718_v53 }
  0xf5   : > { %vm367_vm2 = vmor %vm365_vm1, %vm366_vm0 }
  0xf6   : > { %v362_v55 = vsub.f32 1.0, %v361_v54 }
  0xf8   : > { %v363_v57 = vmul.f32 %v718_v53, %v362_v55 }
  0xfa   : > { %v364_v59 = vadd.f32 %v718_v53, %v363_v57 }
  0xfc   : > { %v368_v61 = vsel %vm367_vm2, %v718_v53, %v364_v59 }
  0xfd   : > { %v373_v62 = vsel %vm370_vm3, %v372_v60, %v368_v61 }
  0xfe   : > { %v375_v0 = vmul.f32 %v373_v62, %v333_v49 }
 0x100   : > { %v376_v1 = vmul.f32 %v375_v0, %v353_v63 }
 0x102   : > { %409 = vmatmul.f32.vlgmr.msra.gmra.mxu2 %v376_v1 }
 0x181   : > { %416 = sbr.rel (%p589_p2) target bundleno = 391 (0x187), region = 48 }
 0x185   : > { %v410_v2 = vpop.f32.mrf.mxu2 }
 0x186   : > { %417 = vst [vmem:[#allocation2] sm:$0xff] %v410_v2 }
 0x187 PF: > { %p590_p4 = scmp.le.s32.totalorder %s919_s18, 0 }
 0x189   : > { %421 = sbr.rel (%p590_p4) target bundleno = 402 (0x192), region = 52 }
 0x18e   : > { %v422_v3 = vld [vmem:[#allocation2] sm:$0xff] }
 0x18f   : > { %v423_v4 = vadd.f32 %v422_v3, %v410_v2 }
 0x191   : > { %424 = vst [vmem:[#allocation2] sm:$0xff] %v423_v4 }
 0x192 PF: > { %p591_p7 = scmp.ne.s32.totalorder %s919_s18, 2 }
 0x194   : > { %428 = sbr.rel (%p591_p7) target bundleno = 411 (0x19b), region = 56 }
 0x199   : > { %v429_v5 = vld [vmem:[#allocation2] sm:$0xff] }
 0x19a   : > { %430 = vst [vmem:[%s280_s10] sm:$0xff] %v429_v5 }
 0x19b PF: > { %s593_s9 = sshll.u32 %s923_s19, 3  ;;  %s1303_s28 = sld [smem:[#allocation23_spill]] }
 0x19c   : > { %s444_s12 = sshll.u32 %s280_s10, 4  ;;  %s432_s29 = scalar_lea.sflag [#allocation5], %s1136_s4  ;;  %s445_s12 = int_to_ptr.vmem [resolvable:$true] %s444_s12 }
 0x1a1   : > { %s442_s1 = scalar_lea.hbm %s1303_s28, %s593_s9  ;;  %s829_s19 = scalar_lea.hbm %s1303_s28, 16 }
 0x1a2   : > { %s446_s23 = sshll.u32 %s442_s1, 4  ;;  %s447_s23 = int_to_ptr.hbm [resolvable:$true] %s446_s23 }
 0x1a3   : > { %s823_s11 = sshra.s32 %s447_s23, 4  ;;  %s824_s11 = int_to_ptr.hbm [resolvable:$true] %s823_s11 }
 0x1a4   : > { %s825_s18 = scalar_lea.hbm %s824_s11, 8  ;;  %p830_p0 = scmp.lt.s32.totalorder %s824_s11, %s1303_s28 }
 0x1a5   : > { %p826_p10 = scmp.ne.s32.totalorder %s824_s11, %s825_s18  ;;  %p831_p5 = scmp.lt.s32.totalorder %s829_s19, %s825_s18 }
 0x1a7   : > { %p827_p11 = pnand %p826_p10, %p1104_p12  ;;  %p832_p6 = por %p831_p5, %p830_p0 }
 0x1a9   : > { %p828_p3 = pneg %p827_p11 }
 0x1ab   : > { %p833_p8 = pnand %p832_p6, %p828_p3 }
 0x1ad   : > { %836 = shalt.err (!%p833_p8)
}
 0x1ae   : > { %604 = dma.vmem_to_hbm [thread:$0]  (%p1104_p12), %s445_s12, 128, %s447_s23, %s432_s29  }
 0x1af PF: > { %s1304_s4 = sld [smem:[#allocation13_spill]]  ;;  %p621_p13 = scmp.ge.s32.totalorder %s935_s22, 2 }
 0x1b1   : > { %p617_p9 = pnand %p621_p13, %p1113_p1 }
 0x1b3   : > { %p618_p2 = pneg %p617_p9 }
 0x1b5   : > { %s458_s7 = sand.u32 1, %s1304_s4  }
 0x1b6   : > { %s459_s8 = scalar_lea.sflag [#allocation5], %s458_s7 }
 0x1b7   : > { %890 = dma.done.wait (%p618_p2), %s459_s8, 128  }
 0x1b8   : > { %892 = vsyncadd (%p618_p2), %s459_s8, 4294967168  ;;  %s22_s22 = sadd.s32 1, %s935_s22   ;;  %s1306_s24 = sld [smem:[#allocation18_spill]] }
 0x1b9   : > { %p19_p4 = scmp.ge.s32.totalorder %s22_s22, 8   ;;  %s1307_s26 = sld [smem:[#allocation14_spill]] }
 0x1ba   : > { %s1308_s17 = sld [smem:[#allocation19_spill]]  ;;  %s1312_s12 = smov %s899_s13 }
 0x1bb   : > { %s1309_s19 = sld [smem:[#allocation15_spill]]  ;;  %s1313_s13 = smov %s903_s14 }
 0x1bc   : > { %s1310_s6 = sld [smem:[#allocation16_spill]]  ;;  %s1315_s15 = smov %s911_s16 }
 0x1bd   : > { %s1311_s21 = sld [smem:[#allocation17_spill]]  ;;  %s1317_s18 = smov %s927_s20 }
 0x1be   : > { %s1314_s14 = smov %s1306_s24  ;;  %21 = sbr.rel (!%p19_p4) target bundleno = 14 (0xe), region = 113 }
 0x1bf   : > { %s1316_s16 = smov %s1307_s26 }
 0x1c2   : > { %s1318_s20 = smov %s1310_s6 }
 0x1c3   :  { %465 = vsyncpa [#allocation4], 1 }
 0x1c4   :  { %467 = vsyncpa [#allocation4 + $0x1], 1 }
 0x1c5   :  { %468 = vsyncpa [#allocation7], 1 }
 0x1c6   :  { %470 = vsyncpa [#allocation7 + $0x1], 1 }
 0x1c7   :  { %471 = vsyncpa [#allocation5], 1 }
 0x1c8   :  { %473 = vsyncpa [#allocation5 + $0x1], 1 }

</bundles_post_ra>
